<compile_context>
chip_gen: v7x
topology: tpu7x:2x2x1
jax: 0.10.0
libtpu: 0.0.40
codegen_flags: <defaults>
</compile_context>

<pallas_src>
import math
import functools

import jax
import jax.numpy as jnp
from jax.experimental import pallas as pl
from jax.experimental.pallas import tpu as pltpu


_SUBLANE_PACK = {4: 8, 2: 16, 1: 32}  # itemsize -> rows per sublane tile


def get_positional_encoding(d_model: int, max_len: int = 5000) -> jnp.ndarray:
    """Standard sinusoidal positional encoding, shape (max_len, 1, d_model)."""
    assert d_model % 2 == 0, "sinusoidal positional encoding needs an even d_model"
    pos = jnp.arange(max_len, dtype=jnp.float32)[:, None]           # (max_len, 1)
    two_i = jnp.arange(0, d_model, 2, dtype=jnp.float32)            # (d_model//2,)
    div = jnp.exp(two_i * (-math.log(10000.0) / d_model))           # (d_model//2,)
    pe = jnp.zeros((max_len, d_model), dtype=jnp.float32)
    pe = pe.at[:, 0::2].set(jnp.sin(pos * div))
    pe = pe.at[:, 1::2].set(jnp.cos(pos * div))
    return pe[:, None, :]                                            # (max_len, 1, d_model)


def _pe_add_kernel(x_ref, pe_ref, o_ref, *, scale, repeat):
    # x_ref/o_ref: (ts, bt*D) lane-dense flattened block; pe_ref: (ts, D) f32.
    pe = pe_ref[...].astype(jnp.float32)
    if repeat > 1:
        # Replicate PE across the `repeat` batch segments of the block's last
        # dim.  When D % 128 == 0 these are aligned whole-vreg copies; for a
        # small misaligned D the tile is tiny, so the lane shifts are noise.
        pe = jnp.concatenate([pe] * repeat, axis=-1)
    x = x_ref[...].astype(jnp.float32)
    o_ref[...] = (x * scale + pe).astype(o_ref.dtype)


def _round_up(v, m):
    return ((v + m - 1) // m) * m


def _padded_block_bytes(rows, cols, itemsize):
    pack = _SUBLANE_PACK.get(itemsize, 8)
    return _round_up(rows, pack) * _round_up(cols, 128) * itemsize


def _choose_seq_tile(S, block_row_bytes, pack, target_bytes, prefer_even):
    """~target-sized blocks, sublane-aligned, even grid length when possible."""
    if S <= pack:
        return S
    nb = max(1, -(-(S * block_row_bytes) // target_bytes))          # ceil
    if prefer_even:
        # v7x has 2 TensorCores: an even grid >= 2 shards evenly under
        # "parallel" semantics; odd grids leave ~1/nb imbalance.
        if nb < 2:
            nb = 2
        elif nb % 2:
            nb += 1
    nb = min(nb, -(-S // pack))                                      # ts >= pack
    ts = _round_up(-(-S // nb), pack)
    return min(ts, S)


def positional_encoding_forward(x: jnp.ndarray, pe: jnp.ndarray, d_model: int) -> jnp.ndarray:
    """x: (S, B, D); pe: (max_len, 1, D) float32. Returns x * sqrt(d_model) + pe[:S]."""
    S, B, D = x.shape
    assert D == d_model, f"d_model mismatch: x has {D}, module has {d_model}"
    scale = float(math.sqrt(d_model))
    itemsize = jnp.dtype(x.dtype).itemsize
    pack = _SUBLANE_PACK.get(itemsize, 8)
    target_block_bytes = 4 * 1024 * 1024    # roofline plateau; fits all generations

    # Lane-dense flattened views (free: contiguous memory, pure reshape).
    x2 = x.reshape(S, B * D)
    pe2 = pe.reshape(pe.shape[0], D)        # full buffer; no wrapper slice/cast

    # Column (batch) tiling only when one sequence row exceeds a block AND D is
    # lane-aligned so every batch segment starts on a vreg boundary.
    row_bytes = B * D * itemsize
    if row_bytes > target_block_bytes and D % 128 == 0:
        bt = max(1, min(B, target_block_bytes // (D * itemsize)))
    else:
        bt = B
        # TODO(synk): B*D*itemsize >> 4 MiB with D % 128 != 0 would need lane
        # tiling inside a batch segment; blocks just get large in that rare case.
    nb_j = pl.cdiv(B, bt)

    ts = _choose_seq_tile(S, bt * D * itemsize, pack, target_block_bytes,
                          prefer_even=(nb_j % 2 == 1))
    nb_s = pl.cdiv(S, ts)

    if ts == S and S % 8 != 0:
        # Block rows must be sublane-aligned or span the full array dim; the
        # (longer) f32 PE buffer needs trimming only in this tiny-S case.
        pe2 = pe2[:S]

    grid = (nb_s, nb_j)

    # Double-buffered padded footprint: x + out blocks (x dtype) + pe block (f32).
    x_blk = _padded_block_bytes(ts, bt * D, itemsize)
    pe_blk = _padded_block_bytes(ts, D, 4)
    footprint = 2 * (2 * x_blk + pe_blk)
    vmem_limit = min(128 * 1024 * 1024,
                     max(32 * 1024 * 1024, int(footprint * 1.25)))

    cost = pl.CostEstimate(
        flops=2 * S * B * D,
        transcendentals=0,
        bytes_accessed=2 * S * B * D * itemsize + S * D * 4 * nb_j,
    )
    cparams = pltpu.CompilerParams(
        dimension_semantics=("parallel", "parallel"),
        vmem_limit_bytes=vmem_limit,
    )

    kernel = functools.partial(_pe_add_kernel, scale=scale, repeat=bt)
    out2 = pl.pallas_call(
        kernel,
        out_shape=jax.ShapeDtypeStruct((S, B * D), x.dtype),
        grid=grid,
        in_specs=[
            pl.BlockSpec((ts, bt * D), lambda i, j: (i, j)),
            pl.BlockSpec((ts, D), lambda i, j: (i, 0)),
        ],
        out_specs=pl.BlockSpec((ts, bt * D), lambda i, j: (i, j)),
        compiler_params=cparams,
        cost_estimate=cost,
    )(x2, pe2)
    return out2.reshape(S, B, D)


if __name__ == "__main__":
    key = jax.random.PRNGKey(0)

    # Case 1: small, unaligned d_model (single-block path, in-kernel PE replication).
    d_model, max_len, seq_len, batch = 32, 64, 8, 2
    x = jax.random.normal(key, (seq_len, batch, d_model), dtype=jnp.float32)
    pe = get_positional_encoding(d_model, max_len)
    out = jax.block_until_ready(positional_encoding_forward(x, pe, d_model))
    ref = x * math.sqrt(d_model) + pe[:seq_len]
    assert out.shape == (seq_len, batch, d_model)
    assert jnp.allclose(out, ref, atol=1e-5, rtol=1e-5)

    # Case 2: lane-aligned d_model, sequence grid of 2 (even grid, full PE passed).
    d_model2, seq_len2, batch2 = 128, 16, 2
    k2 = jax.random.fold_in(key, 1)
    x2 = jax.random.normal(k2, (seq_len2, batch2, d_model2), dtype=jnp.float32)
    pe2 = get_positional_encoding(d_model2, 64)
    out2 = jax.block_until_ready(positional_encoding_forward(x2, pe2, d_model2))
    ref2 = x2 * math.sqrt(d_model2) + pe2[:seq_len2]
    assert jnp.allclose(out2, ref2, atol=1e-5, rtol=1e-5)

    # Case 3: bf16 activations (16-row sublane packing, in-kernel f32 add + cast).
    d_model3, seq_len3, batch3 = 256, 32, 4
    k3 = jax.random.fold_in(key, 2)
    x3 = jax.random.normal(k3, (seq_len3, batch3, d_model3), dtype=jnp.bfloat16)
    pe3 = get_positional_encoding(d_model3, 64)
    out3 = jax.block_until_ready(positional_encoding_forward(x3, pe3, d_model3))
    ref3 = (x3.astype(jnp.float32) * math.sqrt(d_model3) + pe3[:seq_len3]).astype(jnp.bfloat16)
    assert jnp.allclose(out3.astype(jnp.float32), ref3.astype(jnp.float32),
                        atol=1e-2, rtol=1e-2)

    print("KERNEL_OK")
</pallas_src>

<mosaic_0001>
module attributes {stable_mosaic.version = 11 : i64} {
  func.func @_pe_add_kernel(%arg0: i32, %arg1: i32, %arg2: memref<8x64xf32, #tpu.memory_space<vmem>>, %arg3: memref<8x32xf32, #tpu.memory_space<vmem>>, %arg4: memref<8x64xf32, #tpu.memory_space<vmem>>) attributes {dimension_semantics = [#tpu.dimension_semantics<parallel>, #tpu.dimension_semantics<parallel>], iteration_bounds = array<i64: 1, 1>, scalar_prefetch = 0 : i64, scratch_operands = 0 : i64, tpu.core_type = #tpu.core_type<tc>, window_params = [{transform_indices = @transform_0, window_bounds = array<i64: 8, 64>}, {transform_indices = @transform_1, window_bounds = array<i64: 8, 32>}, {transform_indices = @transform_2, window_bounds = array<i64: 8, 64>}]} {
    %c0 = arith.constant 0 : index
    %c0_0 = arith.constant 0 : index
    %0 = vector.load %arg3[%c0, %c0_0] : memref<8x32xf32, #tpu.memory_space<vmem>>, vector<8x32xf32>
    %1 = tpu.concatenate %0, %0 in 1 : vector<8x32xf32>, vector<8x32xf32> -> vector<8x64xf32>
    %c0_1 = arith.constant 0 : index
    %c0_2 = arith.constant 0 : index
    %2 = vector.load %arg2[%c0_1, %c0_2] : memref<8x64xf32, #tpu.memory_space<vmem>>, vector<8x64xf32>
    %cst = arith.constant 5.65685415 : f32
    %3 = vector.broadcast %cst : f32 to vector<8x64xf32>
    %4 = arith.mulf %2, %3 : vector<8x64xf32>
    %5 = arith.addf %4, %1 : vector<8x64xf32>
    %c0_3 = arith.constant 0 : index
    %c0_4 = arith.constant 0 : index
    %6 = vector.load %arg4[%c0_3, %c0_4] : memref<8x64xf32, #tpu.memory_space<vmem>>, vector<8x64xf32>
    tpu.vector_store %arg4[%c0_3, %c0_4], %5 {strides = array<i32>} : memref<8x64xf32, #tpu.memory_space<vmem>>, vector<8x64xf32>,
    return
  }
  func.func @transform_0(%arg0: i32, %arg1: i32) -> (i32, i32) {
    %c0_i32 = arith.constant 0 : i32
    return %arg0, %arg1 : i32, i32
  }
  func.func @transform_1(%arg0: i32, %arg1: i32) -> (i32, i32) {
    %c0_i32 = arith.constant 0 : i32
    %c0_i32_0 = arith.constant 0 : i32
    return %arg0, %c0_i32 : i32, i32
  }
  func.func @transform_2(%arg0: i32, %arg1: i32) -> (i32, i32) {
    %c0_i32 = arith.constant 0 : i32
    return %arg0, %arg1 : i32, i32
  }
}

</mosaic_0001>

<bundles_post_ra>
// kernel: tpu_custom_call.1
= control target key start
LH: loop header
LB: loop body
LE: loop exit
PB: predicated region body
PF: predicated region fallthrough
CT: control target
= control target key end

     0   :  { %s99_s0 = inlined_call_operand.vmem [shape: f32[8,64], index: 0, kind: input, shape index: {}]   ;;  %s100_s1 = inlined_call_operand.vmem [shape: f32[64,32], index: 1, kind: input, shape index: {}]   ;;  %s101_s2 = inlined_call_operand.hbm [shape: f32[8,64], index: 2, kind: output, shape index: {}]  }
   0x1   :  { %v12_v0 = vld [vmem:[%s100_s1] sm:$0xff] }
   0x2   :  { %7 = vsyncpa [#allocation3], 0  ;;  %s64_s11 = smov 32   ;;  %v19_v1 = vld [vmem:[%s99_s0] sm:$0xff]  ;;  %vm17_vm0 = vcmask 261120   ;;  %s65_s14 = smov [#allocation2]  }
   0x3   :  { %14 = vrot.lane.b32.xlu0 %v12_v0, %s64_s11  ;;  %v20_v2 = vmul.f32 5.656854, %v19_v1  ;;  %s30_s15 = sshll.u32 %s65_s14, 4  ;;  %vm22_vm1 = vcmask 523264   ;;  %s31_s15 = int_to_ptr.vmem [resolvable:$true] %s30_s15 }
   0x4   :  { %s40_s16 = scalar_lea.vmem %s31_s15, 128  ;;  %p45_p1 = scmp.lt.s32.totalorder %s31_s15, %s31_s15 }
   0x5   :  { %p41_p0 = scmp.ne.s32.totalorder %s31_s15, %s40_s16  ;;  %p46_p2 = scmp.lt.s32.totalorder %s40_s16, %s40_s16 }
   0x7   :  { %p47_p3 = por %p46_p2, %p45_p1 }
   0x9   :  { %p48_p4 = pnand %p47_p3, %p41_p0 }
  0x75   :  { %v15_v3 = vpop.permute.xlu0 %14 }
  0x76   :  { %v18_v4 = vsel %vm17_vm0, %v12_v0, %v15_v3 }
  0x77   :  { %v21_v5 = vadd.f32 %v20_v2, %v18_v4 }
  0x79   :  { %23 = vst.msk [vmem:[#allocation2] sm:$0xff] %vm22_vm1, %v21_v5 }
  0x7a   :  { %51 = shalt.err (!%p48_p4)
}
  0x7b   :  { %s52_s0 = scalar_lea.hbm %s101_s2, 128 }
  0x7c   :  { %p53_p5 = scmp.ne.s32.totalorder %s101_s2, %s52_s0  ;;  %p56_p6 = scmp.lt.u32.totalorder %s52_s0, %s101_s2 }
  0x7e   :  { %p58_p7 = pnand %p56_p6, %p53_p5 }
  0x80   :  { %61 = shalt.err (!%p58_p7)
}
  0x81   :  { %33 = dma.vmem_to_hbm [thread:$0]  %s31_s15, 128, %s101_s2, [#allocation3]  }
  0x82   :  { %62 = dma.done.wait [#allocation3], 128  }
  0x83   :  { %63 = vsyncadd [#allocation3], 4294967168 }
  0x84   :  { %37 = vsyncpa [#allocation3], 1 }

</bundles_post_ra>
